<compile_context>
chip_gen: v7x
topology: tpu7x:2x2x1
jax: 0.10.0
libtpu: 0.0.40
codegen_flags: <defaults>
</compile_context>

<pallas_src>
import jax
import jax.numpy as jnp
from jax import lax
from jax.experimental import pallas as pl
from jax.experimental.pallas import tpu as pltpu


def _proto_prompt_kernel(feat_ref, memw_ref, w_ref, out_ref):
    # feat_ref : (Nb, C, HW)    Nb batch elements, channels on sublanes
    # memw_ref : (M, C)         MemoryUnit weight (resident)
    # w_ref    : (C_out, 2C+2)  packed [W_feat | W_proto | w_sim | bias]
    # out_ref  : (Nb, C_out, HW)
    nb, c, hw = feat_ref.shape
    c_out = w_ref.shape[0]

    f = feat_ref[...]                                      # (Nb, C, HW)
    memw = memw_ref[...]                                   # (M, C)
    w = w_ref[...]                                         # (C_out, 2C+2)
    wf = w[:, :c]                                          # (C_out, C)
    wp = w[:, c:2 * c]                                     # (C_out, C)
    ws = w[:, 2 * c:2 * c + 1]                             # (C_out, 1)
    bias = w[:, 2 * c + 1:2 * c + 2]                       # (C_out, 1)

    # --- batched global avg + max pooling over the spatial (lane) axis ---
    proto = jnp.sum(f, axis=2) * (1.0 / hw) + jnp.max(f, axis=2)   # (Nb, C)

    # --- batched MemoryUnit: softmax(proto @ W^T) @ W ---
    att = lax.dot_general(proto, memw, (((1,), (1,)), ((), ())),
                          preferred_element_type=jnp.float32)      # (Nb, M)
    att = att - jnp.max(att, axis=1, keepdims=True)
    e = jnp.exp(att)
    att = e / jnp.sum(e, axis=1, keepdims=True)            # exact: only M lanes
    di = jnp.dot(att, memw, preferred_element_type=jnp.float32)    # (Nb, C)

    # --- effective bias for all Nb at once: W_proto @ di^T + b ---
    eff_bias = lax.dot_general(wp, di, (((1,), (1,)), ((), ())),
                               preferred_element_type=jnp.float32)  # (C_out, Nb)
    eff_bias = eff_bias + bias                             # (C_out, Nb)

    d_norm_sq = jnp.sum(di * di, axis=1, keepdims=True)    # (Nb, 1)

    # --- per batch element: 1x1 conv + cosine map (Nb is small and static) ---
    for n in range(nb):
        f_n = f[n]                                         # (C, HW)
        di_n = di[n:n + 1, :]                              # (1, C)

        # Two MXU dots sharing the same RHS (no per-step LHS concatenate).
        feat_part = jnp.dot(wf, f_n,
                            preferred_element_type=jnp.float32)     # (C_out, HW)
        dot_fd = jnp.dot(di_n, f_n,
                         preferred_element_type=jnp.float32)        # (1, HW)

        # cosine similarity along channels; clamp matches the reference:
        #   max(||f||*||d||, 1e-7)  ==  rsqrt(max(prod, 1e-14))
        f_norm_sq = jnp.sum(f_n * f_n, axis=0, keepdims=True)       # (1, HW)
        inv_den = lax.rsqrt(
            jnp.maximum(f_norm_sq * d_norm_sq[n:n + 1, :], 1e-14))  # (1, HW) EUP
        cos = dot_fd * inv_den                                      # (1, HW)

        out_n = feat_part + ws * cos + eff_bias[:, n:n + 1]         # (C_out, HW)
        out_ref[n] = out_n.astype(out_ref.dtype)           # lane-dense store


def _pick_batch_block(n, max_nb=8):
    """Largest divisor of n that is <= max_nb (>= 1)."""
    for cand in range(min(n, max_nb), 0, -1):
        if n % cand == 0:
            return cand
    return 1


def prototype_prompt_generate(feature_nchw, mem_weight, conv_weight, conv_bias):
    """Mirrors PrototypePromptGenerate.forward.

    Args:
      feature_nchw: (N, C, H, W) float32
      mem_weight:   (M, C)       MemoryUnit weight
      conv_weight:  (C_out, 2C+1, 1, 1)  fuse_conv weight (PyTorch layout)
      conv_bias:    (C_out,)
    Returns:
      sparse_embeddings: (1, 0, C)
      prompt:            (N, C_out, H, W)
    """
    N, C, H, W = feature_nchw.shape
    M, C_mem = mem_weight.shape
    assert C_mem == C
    C_out = conv_weight.shape[0]
    assert conv_weight.shape[1] == 2 * C + 1
    HW = H * W

    # Metadata-only reshape: keeps NCHW order, no transpose / HBM round-trip.
    feature = feature_nchw.reshape(N, C, HW)

    # Pack every small weight operand into ONE lane-aligned resident block:
    #   [ W_feat | W_proto | w_sim | bias ]  ->  (C_out, 2C+2)
    w2d = conv_weight[:, :, 0, 0]                          # (C_out, 2C+1)
    w_packed = jnp.concatenate([w2d, conv_bias.reshape(C_out, 1)], axis=1)

    # Several batch elements per grid step to amortize per-step overhead.
    nb = _pick_batch_block(N)
    grid = (N // nb,)

    # Explicit VMEM budget: double-buffered in/out blocks + resident weights.
    block_bytes = 2 * (nb * C * HW + nb * C_out * HW) * 4
    weight_bytes = (M * C + C_out * (2 * C + 2)) * 4
    vmem_limit = int(min(max(4 * (block_bytes + weight_bytes), 32 << 20),
                         100 << 20))

    prompt_flat = pl.pallas_call(
        _proto_prompt_kernel,
        out_shape=jax.ShapeDtypeStruct((N, C_out, HW), jnp.float32),
        grid_spec=pltpu.PrefetchScalarGridSpec(
            num_scalar_prefetch=0,
            grid=grid,
            in_specs=[
                pl.BlockSpec((nb, C, HW), lambda i: (i, 0, 0)),
                # Constant index_maps: weights stay resident, no re-DMA per step.
                pl.BlockSpec((M, C), lambda i: (0, 0)),
                pl.BlockSpec((C_out, 2 * C + 2), lambda i: (0, 0)),
            ],
            out_specs=pl.BlockSpec((nb, C_out, HW), lambda i: (i, 0, 0)),
        ),
        compiler_params=pltpu.CompilerParams(
            dimension_semantics=("parallel",),
            vmem_limit_bytes=vmem_limit,
        ),
    )(feature, mem_weight, w_packed)

    prompt = prompt_flat.reshape(N, C_out, H, W)           # metadata-only
    sparse_embeddings = jnp.zeros((1, 0, C), dtype=jnp.float32)
    return sparse_embeddings, prompt


def _reference(feature_nchw, mem_weight, conv_weight, conv_bias):
    """Pure-JAX reference following the PyTorch code path exactly."""
    hp = jax.lax.Precision.HIGHEST
    proto = (jnp.mean(feature_nchw, axis=(2, 3))
             + jnp.max(feature_nchw, axis=(2, 3)))               # (N, C)
    att = jax.nn.softmax(jnp.dot(proto, mem_weight.T, precision=hp), axis=1)
    di = jnp.dot(att, mem_weight, precision=hp)                  # (N, C)
    info = jnp.broadcast_to(di[:, :, None, None], feature_nchw.shape)
    num = jnp.sum(info * feature_nchw, axis=1)
    den = jnp.maximum(
        jnp.linalg.norm(info, axis=1) * jnp.linalg.norm(feature_nchw, axis=1),
        1e-7)
    cos = (num / den)[:, None]                                   # (N, 1, H, W)
    cat = jnp.concatenate([feature_nchw, info, cos], axis=1)     # (N, 2C+1, H, W)
    w = conv_weight[:, :, 0, 0]                                  # (C_out, 2C+1)
    prompt = (jnp.einsum('ncHW,oc->noHW', cat, w, precision=hp)
              + conv_bias[None, :, None, None])
    return prompt


if __name__ == "__main__":
    # Small shapes consistent with the module (mem_dim == embed_dim == C).
    N, C, H, W = 2, 32, 16, 16
    M = 32            # mem_dim
    C_out = C         # fuse_conv: (2C+1) -> C

    key = jax.random.PRNGKey(0)
    k_feat, k_mem, k_cw, k_cb = jax.random.split(key, 4)

    feature = jax.random.normal(k_feat, (N, C, H, W), dtype=jnp.float32)

    # MemoryUnit.reset_parameters: uniform(-1/sqrt(fea_dim), 1/sqrt(fea_dim))
    stdv = 1.0 / jnp.sqrt(jnp.float32(C))
    mem_weight = jax.random.uniform(k_mem, (M, C), jnp.float32, -stdv, stdv)

    # nn.Conv2d(2C+1, C_out, 1) default init bound = 1/sqrt(fan_in)
    bound = 1.0 / jnp.sqrt(jnp.float32(2 * C + 1))
    conv_weight = jax.random.uniform(k_cw, (C_out, 2 * C + 1, 1, 1),
                                     jnp.float32, -bound, bound)
    conv_bias = jax.random.uniform(k_cb, (C_out,), jnp.float32, -bound, bound)

    run = jax.jit(prototype_prompt_generate)
    sparse, prompt = run(feature, mem_weight, conv_weight, conv_bias)
    jax.block_until_ready(prompt)

    assert sparse.shape == (1, 0, C)
    assert prompt.shape == (N, C_out, H, W)

    ref = _reference(feature, mem_weight, conv_weight, conv_bias)
    max_err = float(jnp.max(jnp.abs(prompt - ref)))
    assert jnp.allclose(prompt, ref, atol=2e-3, rtol=2e-3), max_err

    print("KERNEL_OK")
</pallas_src>

<mosaic_0001>
module attributes {stable_mosaic.version = 11 : i64} {
  func.func @_proto_prompt_kernel(%arg0: i32, %arg1: memref<2x32x256xf32, #tpu.memory_space<vmem>>, %arg2: memref<32x32xf32, #tpu.memory_space<vmem>>, %arg3: memref<32x66xf32, #tpu.memory_space<vmem>>, %arg4: memref<2x32x256xf32, #tpu.memory_space<vmem>>) attributes {dimension_semantics = [#tpu.dimension_semantics<parallel>], iteration_bounds = array<i64: 1>, scalar_prefetch = 0 : i64, scratch_operands = 0 : i64, tpu.core_type = #tpu.core_type<tc>, window_params = [{transform_indices = @transform_0, window_bounds = array<i64: 2, 32, 256>}, {pipeline_mode = #tpu.pipeline_mode<synchronous>, transform_indices = @transform_1, window_bounds = array<i64: 32, 32>}, {pipeline_mode = #tpu.pipeline_mode<synchronous>, transform_indices = @transform_2, window_bounds = array<i64: 32, 66>}, {transform_indices = @transform_3, window_bounds = array<i64: 2, 32, 256>}]} {
    %c0 = arith.constant 0 : index
    %c0_0 = arith.constant 0 : index
    %c0_1 = arith.constant 0 : index
    %0 = vector.load %arg1[%c0, %c0_0, %c0_1] : memref<2x32x256xf32, #tpu.memory_space<vmem>>, vector<2x32x256xf32>
    %c0_2 = arith.constant 0 : index
    %c0_3 = arith.constant 0 : index
    %1 = vector.load %arg2[%c0_2, %c0_3] : memref<32x32xf32, #tpu.memory_space<vmem>>, vector<32x32xf32>
    %c0_4 = arith.constant 0 : index
    %c0_5 = arith.constant 0 : index
    %2 = vector.load %arg3[%c0_4, %c0_5] : memref<32x66xf32, #tpu.memory_space<vmem>>, vector<32x66xf32>
    %3 = vector.extract_strided_slice %2 {offsets = [0, 0], sizes = [32, 32], strides = [1, 1]} : vector<32x66xf32> to vector<32x32xf32>
    %4 = vector.extract_strided_slice %2 {offsets = [0, 32], sizes = [32, 32], strides = [1, 1]} : vector<32x66xf32> to vector<32x32xf32>
    %5 = vector.extract_strided_slice %2 {offsets = [0, 64], sizes = [32, 1], strides = [1, 1]} : vector<32x66xf32> to vector<32x1xf32>
    %6 = vector.extract_strided_slice %2 {offsets = [0, 65], sizes = [32, 1], strides = [1, 1]} : vector<32x66xf32> to vector<32x1xf32>
    %cst = arith.constant dense<0.000000e+00> : vector<2x32xf32>
    %7 = vector.multi_reduction <add>, %0, %cst [2] : vector<2x32x256xf32> to vector<2x32xf32>
    %cst_6 = arith.constant 3.906250e-03 : f32
    %8 = vector.broadcast %cst_6 : f32 to vector<2x32xf32>
    %9 = arith.mulf %7, %8 : vector<2x32xf32>
    %cst_7 = arith.constant dense<0xFF800000> : vector<2x32xf32>
    %10 = vector.multi_reduction <maximumf>, %0, %cst_7 [2] : vector<2x32x256xf32> to vector<2x32xf32>
    %11 = arith.addf %9, %10 : vector<2x32xf32>
    %cst_8 = arith.constant dense<0.000000e+00> : vector<2x32xf32>
    %12 = tpu.matmul %11, %1, %cst_8 {dimension_numbers = #tpu.dot_dimension_numbers<[1], [1], [0], [0], [0, 0, 1, 0], [], []>} : vector<2x32xf32>, vector<32x32xf32>, vector<2x32xf32> -> vector<2x32xf32>
    %cst_9 = arith.constant dense<0xFF800000> : vector<2xf32>
    %13 = vector.multi_reduction <maximumf>, %12, %cst_9 [1] : vector<2x32xf32> to vector<2xf32>
    %14 = vector.shape_cast %13 : vector<2xf32> to vector<2x1xf32>
    %15 = vector.broadcast %14 : vector<2x1xf32> to vector<2x32xf32>
    %16 = arith.subf %12, %15 : vector<2x32xf32>
    %17 = math.exp %16 : vector<2x32xf32>
    %cst_10 = arith.constant dense<0.000000e+00> : vector<2xf32>
    %18 = vector.multi_reduction <add>, %17, %cst_10 [1] : vector<2x32xf32> to vector<2xf32>
    %19 = vector.shape_cast %18 : vector<2xf32> to vector<2x1xf32>
    %20 = vector.broadcast %19 : vector<2x1xf32> to vector<2x32xf32>
    %21 = arith.divf %17, %20 : vector<2x32xf32>
    %cst_11 = arith.constant dense<0.000000e+00> : vector<2x32xf32>
    %22 = tpu.matmul %21, %1, %cst_11 {dimension_numbers = #tpu.dot_dimension_numbers<[1], [0], [0], [1], [0, 0, 1, 1], [], []>} : vector<2x32xf32>, vector<32x32xf32>, vector<2x32xf32> -> vector<2x32xf32>
    %cst_12 = arith.constant dense<0.000000e+00> : vector<32x2xf32>
    %23 = tpu.matmul %4, %22, %cst_12 {dimension_numbers = #tpu.dot_dimension_numbers<[1], [1], [0], [0], [0, 0, 1, 0], [], []>} : vector<32x32xf32>, vector<2x32xf32>, vector<32x2xf32> -> vector<32x2xf32>
    %24 = vector.broadcast %6 : vector<32x1xf32> to vector<32x2xf32>
    %25 = arith.addf %23, %24 : vector<32x2xf32>
    %26 = arith.mulf %22, %22 : vector<2x32xf32>
    %cst_13 = arith.constant dense<0.000000e+00> : vector<2xf32>
    %27 = vector.multi_reduction <add>, %26, %cst_13 [1] : vector<2x32xf32> to vector<2xf32>
    %28 = vector.shape_cast %27 : vector<2xf32> to vector<2x1xf32>
    %29 = vector.extract_strided_slice %0 {offsets = [0, 0, 0], sizes = [1, 32, 256], strides = [1, 1, 1]} : vector<2x32x256xf32> to vector<1x32x256xf32>
    %30 = vector.shape_cast %29 : vector<1x32x256xf32> to vector<32x256xf32>
    %31 = vector.extract_strided_slice %22 {offsets = [0, 0], sizes = [1, 32], strides = [1, 1]} : vector<2x32xf32> to vector<1x32xf32>
    %cst_14 = arith.constant dense<0.000000e+00> : vector<32x256xf32>
    %32 = tpu.matmul %3, %30, %cst_14 {dimension_numbers = #tpu.dot_dimension_numbers<[1], [0], [0], [1], [0, 0, 1, 1], [], []>} : vector<32x32xf32>, vector<32x256xf32>, vector<32x256xf32> -> vector<32x256xf32>
    %cst_15 = arith.constant dense<0.000000e+00> : vector<1x256xf32>
    %33 = tpu.matmul %31, %30, %cst_15 {dimension_numbers = #tpu.dot_dimension_numbers<[1], [0], [0], [1], [0, 0, 1, 1], [], []>} : vector<1x32xf32>, vector<32x256xf32>, vector<1x256xf32> -> vector<1x256xf32>
    %34 = arith.mulf %30, %30 : vector<32x256xf32>
    %cst_16 = arith.constant dense<0.000000e+00> : vector<256xf32>
    %35 = vector.multi_reduction <add>, %34, %cst_16 [0] : vector<32x256xf32> to vector<256xf32>
    %36 = vector.shape_cast %35 : vector<256xf32> to vector<1x256xf32>
    %37 = vector.extract_strided_slice %28 {offsets = [0, 0], sizes = [1, 1], strides = [1, 1]} : vector<2x1xf32> to vector<1x1xf32>
    %38 = vector.broadcast %37 : vector<1x1xf32> to vector<1x256xf32>
    %39 = arith.mulf %36, %38 : vector<1x256xf32>
    %cst_17 = arith.constant 9.99999982E-15 : f32
    %40 = vector.broadcast %cst_17 : f32 to vector<1x256xf32>
    %41 = arith.maximumf %39, %40 : vector<1x256xf32>
    %42 = math.rsqrt %41 : vector<1x256xf32>
    %43 = arith.mulf %33, %42 : vector<1x256xf32>
    %44 = vector.broadcast %5 : vector<32x1xf32> to vector<32x256xf32>
    %45 = vector.broadcast %43 : vector<1x256xf32> to vector<32x256xf32>
    %46 = arith.mulf %44, %45 : vector<32x256xf32>
    %47 = arith.addf %32, %46 : vector<32x256xf32>
    %48 = vector.extract_strided_slice %25 {offsets = [0, 0], sizes = [32, 1], strides = [1, 1]} : vector<32x2xf32> to vector<32x1xf32>
    %49 = vector.broadcast %48 : vector<32x1xf32> to vector<32x256xf32>
    %50 = arith.addf %47, %49 : vector<32x256xf32>
    %c0_18 = arith.constant 0 : index
    %c0_19 = arith.constant 0 : index
    %c0_20 = arith.constant 0 : index
    %51 = vector.load %arg4[%c0_18, %c0_19, %c0_20] : memref<2x32x256xf32, #tpu.memory_space<vmem>>, vector<1x32x256xf32>
    %52 = vector.shape_cast %51 : vector<1x32x256xf32> to vector<32x256xf32>
    %53 = vector.shape_cast %50 : vector<32x256xf32> to vector<1x32x256xf32>
    tpu.vector_store %arg4[%c0_18, %c0_19, %c0_20], %53 {strides = array<i32>} : memref<2x32x256xf32, #tpu.memory_space<vmem>>, vector<1x32x256xf32>,
    %54 = vector.extract_strided_slice %0 {offsets = [1, 0, 0], sizes = [1, 32, 256], strides = [1, 1, 1]} : vector<2x32x256xf32> to vector<1x32x256xf32>
    %55 = vector.shape_cast %54 : vector<1x32x256xf32> to vector<32x256xf32>
    %56 = vector.extract_strided_slice %22 {offsets = [1, 0], sizes = [1, 32], strides = [1, 1]} : vector<2x32xf32> to vector<1x32xf32>
    %cst_21 = arith.constant dense<0.000000e+00> : vector<32x256xf32>
    %57 = tpu.matmul %3, %55, %cst_21 {dimension_numbers = #tpu.dot_dimension_numbers<[1], [0], [0], [1], [0, 0, 1, 1], [], []>} : vector<32x32xf32>, vector<32x256xf32>, vector<32x256xf32> -> vector<32x256xf32>
    %cst_22 = arith.constant dense<0.000000e+00> : vector<1x256xf32>
    %58 = tpu.matmul %56, %55, %cst_22 {dimension_numbers = #tpu.dot_dimension_numbers<[1], [0], [0], [1], [0, 0, 1, 1], [], []>} : vector<1x32xf32>, vector<32x256xf32>, vector<1x256xf32> -> vector<1x256xf32>
    %59 = arith.mulf %55, %55 : vector<32x256xf32>
    %cst_23 = arith.constant dense<0.000000e+00> : vector<256xf32>
    %60 = vector.multi_reduction <add>, %59, %cst_23 [0] : vector<32x256xf32> to vector<256xf32>
    %61 = vector.shape_cast %60 : vector<256xf32> to vector<1x256xf32>
    %62 = vector.extract_strided_slice %28 {offsets = [1, 0], sizes = [1, 1], strides = [1, 1]} : vector<2x1xf32> to vector<1x1xf32>
    %63 = vector.broadcast %62 : vector<1x1xf32> to vector<1x256xf32>
    %64 = arith.mulf %61, %63 : vector<1x256xf32>
    %cst_24 = arith.constant 9.99999982E-15 : f32
    %65 = vector.broadcast %cst_24 : f32 to vector<1x256xf32>
    %66 = arith.maximumf %64, %65 : vector<1x256xf32>
    %67 = math.rsqrt %66 : vector<1x256xf32>
    %68 = arith.mulf %58, %67 : vector<1x256xf32>
    %69 = vector.broadcast %5 : vector<32x1xf32> to vector<32x256xf32>
    %70 = vector.broadcast %68 : vector<1x256xf32> to vector<32x256xf32>
    %71 = arith.mulf %69, %70 : vector<32x256xf32>
    %72 = arith.addf %57, %71 : vector<32x256xf32>
    %73 = vector.extract_strided_slice %25 {offsets = [0, 1], sizes = [32, 1], strides = [1, 1]} : vector<32x2xf32> to vector<32x1xf32>
    %74 = vector.broadcast %73 : vector<32x1xf32> to vector<32x256xf32>
    %75 = arith.addf %72, %74 : vector<32x256xf32>
    %c1 = arith.constant 1 : index
    %c0_25 = arith.constant 0 : index
    %c0_26 = arith.constant 0 : index
    %76 = vector.load %arg4[%c1, %c0_25, %c0_26] : memref<2x32x256xf32, #tpu.memory_space<vmem>>, vector<1x32x256xf32>
    %77 = vector.shape_cast %76 : vector<1x32x256xf32> to vector<32x256xf32>
    %78 = vector.shape_cast %75 : vector<32x256xf32> to vector<1x32x256xf32>
    tpu.vector_store %arg4[%c1, %c0_25, %c0_26], %78 {strides = array<i32>} : memref<2x32x256xf32, #tpu.memory_space<vmem>>, vector<1x32x256xf32>,
    return
  }
  func.func @transform_0(%arg0: i32) -> (i32, i32, i32) {
    %c0_i32 = arith.constant 0 : i32
    %c0_i32_0 = arith.constant 0 : i32
    %c0_i32_1 = arith.constant 0 : i32
    return %arg0, %c0_i32, %c0_i32_0 : i32, i32, i32
  }
  func.func @transform_1(%arg0: i32) -> (i32, i32) {
    %c0_i32 = arith.constant 0 : i32
    %c0_i32_0 = arith.constant 0 : i32
    %c0_i32_1 = arith.constant 0 : i32
    return %c0_i32, %c0_i32_0 : i32, i32
  }
  func.func @transform_2(%arg0: i32) -> (i32, i32) {
    %c0_i32 = arith.constant 0 : i32
    %c0_i32_0 = arith.constant 0 : i32
    %c0_i32_1 = arith.constant 0 : i32
    return %c0_i32, %c0_i32_0 : i32, i32
  }
  func.func @transform_3(%arg0: i32) -> (i32, i32, i32) {
    %c0_i32 = arith.constant 0 : i32
    %c0_i32_0 = arith.constant 0 : i32
    %c0_i32_1 = arith.constant 0 : i32
    return %arg0, %c0_i32, %c0_i32_0 : i32, i32, i32
  }
}

</mosaic_0001>

<bundles_post_ra>
// kernel: prototype_prompt_generate.1
= control target key start
LH: loop header
LB: loop body
LE: loop exit
PB: predicated region body
PF: predicated region fallthrough
CT: control target
= control target key end

     0   :  { %vm158_vm0 = vcmask 261120   ;;  %v1129_v35 = vmov 0.0|0.0   ;;  %vm1130_vm2 = vmmov 0   ;;  %v1131_v39 = vmov 0.0   ;;  %s1133_s27 = smov 96   ;;  %s1506_s0 = inlined_call_operand.vmem [shape: f32[2,32,256], index: 0, kind: input, shape index: {}]   ;;  %s1507_s1 = inlined_call_operand.vmem [shape: f32[32,32], index: 1, kind: input, shape index: {}]   ;;  %s1508_s2 = inlined_call_operand.vmem [shape: f32[32,66], index: 2, kind: input, shape index: {}]   ;;  %s1509_s3 = inlined_call_operand.vmem [shape: f32[2,32,256], index: 3, kind: output, shape index: {}]  }
   0x1   :  { %v1160_v0 = vld [vmem:[%s1506_s0 + $0x40] sm:$0xff]  ;;  %v1165_v1 = vld [vmem:[%s1506_s0 + $0x48] sm:$0xff]  ;;  %v1182_v5 = vld [vmem:[%s1506_s0 + $0x50] sm:$0xff]  ;;  %1056 = vmatprep.subr.bf16.mxu0 %v1129_v35  ;;  %1064 = vmatprep.subr.bf16.mxu1 %v1129_v35  ;;  %v110_v46 = vlaneseq  ;;  %vm121_vm3 = vcmask 130112   ;;  %vm128_vm4 = vcmask 195712   ;;  %vm135_vm5 = vcmask 261312  }
   0x2   :  { %v1170_v2 = vld [vmem:[%s1506_s0] sm:$0xff]  ;;  %v50_v3 = vadd.f32 %v1165_v1, %v1160_v0  ;;  %v1177_v4 = vld [vmem:[%s1506_s0 + $0x8] sm:$0xff]  ;;  %v1187_v6 = vld [vmem:[%s1506_s0 + $0x58] sm:$0xff]  ;;  %v82_v27 = vmax.f32 %v1160_v0, %v1165_v1  ;;  %1034 = vmatprep.mubr.msk.f32.mxu0 %vm1130_vm2, %v1131_v39  ;;  %1045 = vmatprep.mubr.msk.f32.mxu1 %vm1130_vm2, %v1131_v39  ;;  %vm156_vm6 = vcmask 1041409   ;;  %vm243_vm7 = vcmask 254976  }
   0x3   :  { %v38_v7 = vadd.f32 %v1177_v4, %v1170_v2  ;;  %v1194_v8 = vld [vmem:[%s1506_s0 + $0x10] sm:$0xff]  ;;  %v1199_v9 = vld [vmem:[%s1506_s0 + $0x18] sm:$0xff]  ;;  %v53_v10 = vadd.f32 %v1187_v6, %v1182_v5  ;;  %v1208_v12 = vld [vmem:[%s1506_s0 + $0x60] sm:$0xff]  ;;  %v70_v25 = vmax.f32 %v1170_v2, %v1177_v4  ;;  %v85_v26 = vmax.f32 %v1182_v5, %v1187_v6 }
   0x4   :  { %51 = vadd.xlane.f32.xlu1 %v50_v3  ;;  %v41_v11 = vadd.f32 %v1199_v9, %v1194_v8  ;;  %v1213_v13 = vld [vmem:[%s1506_s0 + $0x68] sm:$0xff]  ;;  %v1218_v14 = vld [vmem:[%s1506_s0 + $0x20] sm:$0xff]  ;;  %v1232_v18 = vld [vmem:[%s1506_s0 + $0x70] sm:$0xff]  ;;  %v73_v24 = vmax.f32 %v1194_v8, %v1199_v9  ;;  %v111_v49 = vand.u32 127, %v110_v46  ;;  %v1285_v52 = vshrl.u32 %v110_v46, 7 }
   0x5   :  { %39 = vadd.xlane.f32.xlu0 %v38_v7  ;;  %v1223_v15 = vld [vmem:[%s1506_s0 + $0x28] sm:$0xff]  ;;  %v56_v16 = vadd.f32 %v1213_v13, %v1208_v12  ;;  %v1237_v19 = vld [vmem:[%s1506_s0 + $0x78] sm:$0xff]  ;;  %v1242_v20 = vld [vmem:[%s1506_s0 + $0x30] sm:$0xff]  ;;  %v88_v28 = vmax.f32 %v1208_v12, %v1213_v13 }
   0x6   :  { %v44_v17 = vadd.f32 %v1223_v15, %v1218_v14  ;;  %v1247_v21 = vld [vmem:[%s1506_s0 + $0x38] sm:$0xff]  ;;  %v59_v22 = vadd.f32 %v1237_v19, %v1232_v18  ;;  %v76_v29 = vmax.f32 %v1218_v14, %v1223_v15  ;;  %v91_v30 = vmax.f32 %v1232_v18, %v1237_v19  ;;  %v30_v32 = vld [vmem:[%s1507_s1] sm:$0xff]  ;;  %v31_v33 = vld [vmem:[%s1507_s1 + $0x8] sm:$0xff] }
   0x7   :  { %v47_v23 = vadd.f32 %v1247_v21, %v1242_v20  ;;  %v79_v31 = vmax.f32 %v1242_v20, %v1247_v21  ;;  %v1057_v34 = vpack.c.bf16 %v31_v33, %v30_v32  ;;  %vm1058_vm1 = vmpackc.low %vm158_vm0, %vm158_vm0  ;;  %v32_v36 = vld [vmem:[%s1507_s1 + $0x10] sm:$0xff]  ;;  %v33_v37 = vld [vmem:[%s1507_s1 + $0x18] sm:$0xff]  ;;  %v116_v53 = vadd.s32 4294967288, %v111_v49 }
   0x8   :  { %54 = vadd.xlane.f32.xlu1 %v53_v10  ;;  %v1061_v38 = vpack.c.bf16 %v33_v37, %v32_v36  ;;  %v123_v55 = vadd.s32 4294967280, %v111_v49  ;;  %v114_v62 = vsub.s32 %v111_v49, %v1285_v52  ;;  %v130_v10 = vadd.s32 4294967272, %v111_v49 }
   0x9   :  { %42 = vadd.xlane.f32.xlu0 %v41_v11  ;;  %1059 = vmatpush3.bf16.xpose.msk.msra.mxu0 %vm1058_vm1, %v1057_v34  ;;  %v119_v61 = vsub.s32 %v116_v53, %v1285_v52 }
   0xa   :  { %1066 = vmatpush3.bf16.msra.mxu1 %v1057_v34  ;;  %1060 = vmatprep.subr.bf16.mxu0 %v1129_v35 }
   0xb   :  { %1067 = vmatprep.subr.bf16.mxu1 %v1129_v35 }
   0xc   :  { %57 = vadd.xlane.f32.xlu1 %v56_v16 }
   0xd   :  { %45 = vadd.xlane.f32.xlu0 %v44_v17 }
   0xe   :  { %1069 = vmatpush3.bf16.msra.mxu1 %v1061_v38 }
  0x10   :  { %60 = vadd.xlane.f32.xlu1 %v59_v22  ;;  %v126_v22 = vsub.s32 %v123_v55, %v1285_v52 }
  0x11   :  { %48 = vadd.xlane.f32.xlu0 %v47_v23  ;;  %1063 = vmatpush3.bf16.xpose.msk.msra.mxu0 %vm1058_vm1, %v1061_v38 }
  0x14   :  { %74 = vmax.xlane.f32.xlu1 %v73_v24 }
  0x15   :  { %71 = vmax.xlane.f32.xlu0 %v70_v25 }
  0x18   :  { %86 = vmax.xlane.f32.xlu1 %v85_v26 }
  0x19   :  { %83 = vmax.xlane.f32.xlu0 %v82_v27 }
  0x1c   :  { %89 = vmax.xlane.f32.xlu1 %v88_v28 }
  0x1d   :  { %77 = vmax.xlane.f32.xlu0 %v76_v29 }
  0x20   :  { %92 = vmax.xlane.f32.xlu1 %v91_v30  ;;  %v133_v30 = vsub.s32 %v130_v10, %v1285_v52  ;;  %v1076_v10 = vpack.c.bf16 %v1242_v20, %v1218_v14 }
  0x21   :  { %80 = vmax.xlane.f32.xlu0 %v79_v31 }
  0x91   :  { %v52_v40 = vpop.xlane.xlu1 %51 }
  0x92   :  { %v40_v41 = vpop.xlane.xlu0 %39  ;;  %v66_v56 = vmul.f32 0.00390625, %v52_v40 }
  0x93   :  { %v62_v59 = vmul.f32 0.00390625, %v40_v41 }
  0x95   :  { %v55_v42 = vpop.xlane.xlu1 %54 }
  0x96   :  { %v43_v43 = vpop.xlane.xlu0 %42  ;;  %v67_v57 = vmul.f32 0.00390625, %v55_v42 }
  0x97   :  { %v63_v60 = vmul.f32 0.00390625, %v43_v43 }
  0x99   :  { %v58_v44 = vpop.xlane.xlu1 %57 }
  0x9a   :  { %v46_v45 = vpop.xlane.xlu0 %45  ;;  %v68_v63 = vmul.f32 0.00390625, %v58_v44 }
  0x9b   :  { %v64_v11 = vmul.f32 0.00390625, %v46_v45 }
  0x9d   :  { %v61_v47 = vpop.xlane.xlu1 %60 }
  0x9e   :  { %v49_v48 = vpop.xlane.xlu0 %48  ;;  %v69_v27 = vmul.f32 0.00390625, %v61_v47 }
  0x9f   :  { %v65_v31 = vmul.f32 0.00390625, %v49_v48 }
  0xa1   :  { %v75_v50 = vpop.xlane.xlu1 %74 }
  0xa2   :  { %v72_v51 = vpop.xlane.xlu0 %71  ;;  %v95_v16 = vadd.f32 %v75_v50, %v63_v60  ;;  %v1301_v60 = vpack.c.bf16 %v1194_v8, %v1170_v2 }
  0xa3   :  { %v94_v17 = vadd.f32 %v72_v51, %v62_v59  ;;  %v1297_v59 = vpack.c.bf16 %v1199_v9, %v1177_v4 }
  0xa4   :  { %v120_v32 = vrot.slane %v95_v16, %v119_v61  ;;  %v1336_v16 = vld [vmem:[%s1508_s2 + $0x18] sm:$0xff] }
  0xa5   :  { %v87_v54 = vpop.xlane.xlu1 %86  ;;  %v115_v33 = vrot.slane %v94_v17, %v114_v62  ;;  %1079 = vmatprep.subr.bf16.mxu0 %v1297_v59  ;;  %v1088_v17 = vpack.c.bf16 %v1182_v5, %v1160_v0 }
  0xa6   :  { %v84_v58 = vpop.xlane.xlu0 %83  ;;  %v99_v3 = vadd.f32 %v87_v54, %v67_v57 }
  0xa7   :  { %v98_v7 = vadd.f32 %v84_v58, %v66_v56  ;;  %v122_v43 = vsel %vm121_vm3, %v120_v32, %v115_v33 }
  0xa8   :  { %v144_v28 = vrot.slane %v99_v3, %v119_v61  ;;  %v1306_v61 = vld [vmem:[%s1508_s2 + $0x8] sm:$0xff]  ;;  %v1315_v3 = vpack.c.bf16 %v1247_v21, %v1223_v15 }
  0xa9   :  { %v90_v23 = vpop.xlane.xlu1 %89  ;;  %v140_v29 = vrot.slane %v98_v7, %v114_v62  ;;  %v1311_v62 = vld [vmem:[%s1508_s2] sm:$0xff]  ;;  %v1322_v7 = vld [vmem:[%s1508_s2 + $0x10] sm:$0xff] }
  0xaa   :  { %v100_v24 = vadd.f32 %v90_v23, %v68_v63  ;;  %v78_v25 = vpop.xlane.xlu0 %77  ;;  %v1132_v63 = vmov 65  }
  0xab   :  { %v96_v26 = vadd.f32 %v78_v25, %v64_v11  ;;  %v145_v41 = vsel %vm121_vm3, %v144_v28, %v140_v29  ;;  %1111 = vset.pattern.permute.xlu1 %v1132_v63  ;;  %1110 = vset.pattern.permute.xlu0 %v1132_v63  ;;  %v1086_v11 = vpack.c.bf16 %v1187_v6, %v1165_v1  ;;  %v1134_v28 = vmov 64  }
  0xac   :  { %v149_v34 = vrot.slane %v100_v24, %v126_v22 }
  0xad   :  { %v93_v35 = vpop.xlane.xlu1 %92  ;;  %v127_v36 = vrot.slane %v96_v26, %v126_v22  ;;  %v1090_v22 = vpack.c.bf16 %v1237_v19, %v1213_v13  ;;  %v1092_v26 = vpack.c.bf16 %v1232_v18, %v1208_v12 }
  0xae   :  { %v101_v37 = vadd.f32 %v93_v35, %v69_v27  ;;  %v81_v38 = vpop.xlane.xlu0 %80  ;;  %v150_v44 = vsel %vm128_vm4, %v149_v34, %v145_v41 }
  0xaf   :  { %v97_v40 = vadd.f32 %v81_v38, %v65_v31  ;;  %v129_v46 = vsel %vm128_vm4, %v127_v36, %v122_v43 }
  0xb0   :  { %v154_v42 = vrot.slane %v101_v37, %v133_v30 }
  0xb1   :  { %v134_v45 = vrot.slane %v97_v40, %v133_v30 }
  0xb2   :  { %v155_v47 = vsel %vm135_vm5, %v154_v42, %v150_v44 }
  0xb3   :  { %v136_v48 = vsel %vm135_vm5, %v134_v45, %v129_v46  ;;  %v1135_v46 = vmov 1  }
  0xb4   :  { %v157_v49 = vsel %vm156_vm6, %v155_v47, %v136_v48  ;;  %v1136_v47 = vmov 0   ;;  %v800_v48 = vmul.f32 %v1160_v0, %v1160_v0  ;;  %v806_v0 = vmul.f32 %v1232_v18, %v1232_v18 }
  0xb5   :  { %1035 = vmatmul.mubr.msk.f32.vlgmr.msra.gmra.mrb[0].mxu0 %vm158_vm0, %v157_v49  ;;  %v802_v49 = vmul.f32 %v1182_v5, %v1182_v5  ;;  %v807_v5 = vmul.f32 %v1237_v19, %v1237_v19  ;;  %v531_v18 = vmul.f32 %v1218_v14, %v1218_v14  ;;  %v532_v19 = vmul.f32 %v1223_v15, %v1223_v15 }
  0xb6   :  { %665 = vmatprep.mubr.f32.mxu0 %v1131_v39  ;;  %1081 = vmatpush1.bf16.msra.mxu0 %v1301_v60 }
  0xb7   :  { %1083 = vmatprep.subr.bf16.mxu0 %v1315_v3 }
  0xba   :  { %1085 = vmatpush1.bf16.msra.mxu0 %v1076_v10 }
  0xbb   :  { %1087 = vmatprep.subr.bf16.mxu0 %v1086_v11 }
  0xbd   :  { %994 = vmatmul.mubr.msk.f32.vlgmr.msra.gmra.mrb[2].mxu0 %vm158_vm0, %v1311_v62 }
  0xbe   :  { %671 = vmatprep.mubr.f32.mxu0 %v1131_v39  ;;  %1089 = vmatpush1.bf16.msra.mxu0 %v1088_v17 }
  0xbf   :  { %1091 = vmatprep.subr.bf16.mxu0 %v1090_v22 }
  0xc1   :  { %995 = vmatmul.mubr.msk.f32.gmra.mrb[4].mxu0 %vm158_vm0, %v1306_v61 }
  0xc2   :  { %677 = vmatprep.mubr.f32.mxu0 %v1131_v39  ;;  %1093 = vmatpush1.bf16.msra.mxu0 %v1092_v26 }
  0xc5   :  { %996 = vmatmul.mubr.msk.f32.gmra.mrb[6].mxu0 %vm158_vm0, %v1322_v7 }
  0xc6   :  { %683 = vmatprep.mubr.f32.mxu0 %v1131_v39 }
  0xc9   :  { %997 = vmatmul.mubr.msk.f32.gmra.mrb[8].mxu0 %vm158_vm0, %v1336_v16 }
  0xca   :  { %793 = vmatprep.mubr.f32.mxu0 %v1131_v39 }
 0x188   :  { %v239_v50 = vpop.f32.mrb[0].mxu0 }
 0x189   :  { %v1036_v51 = vpop.f32.mrb[1].mxu0  ;;  %v244_v53 = vsel %vm243_vm7, %v239_v50, -inf }
 0x18a   :  { %245 = vmax.xlane.f32.xlu0 %v244_v53  ;;  %v808_v51 = vadd.f32 %v802_v49, %v800_v48  ;;  %v804_v53 = vmul.f32 %v1208_v12, %v1208_v12  ;;  %v528_v12 = vmul.f32 %v1177_v4, %v1177_v4 }
 0x190   :  { %v1382_v37 = vpop.f32.mrb[2].mxu0 }
 0x191   :  { %v1384_v38 = vpop.f32.mrb[3].mxu0 }
 0x194   :  { %v1388_v40 = vpop.f32.mrb[4].mxu0 }
 0x195   :  { %v1391_v41 = vpop.f32.mrb[5].mxu0 }
 0x198   :  { %v1393_v42 = vpop.f32.mrb[6].mxu0 }
 0x199   :  { %v1395_v43 = vpop.f32.mrb[7].mxu0 }
 0x19c   :  { %v1399_v44 = vpop.f32.mrb[8].mxu0 }
 0x19d   :  { %v1402_v45 = vpop.f32.mrb[9].mxu0 }
 0x1a0   :  { %348 = vrot.lane.b32.xlu0 %v1311_v62, %s1133_s27 }
 0x1a4   :  { %330 = vperm.xlu0 %1110, %v1311_v62  }
 0x1a8   :  { %345 = vperm.xlu0 %1110, %v1336_v16  }
 0x1ac   :  { %1112 = vset.pattern.permute.xlu0 %v1134_v28 }
 0x1ad   :  { %562 = vperm.xlu0 %1112, %v1311_v62  }
 0x1b1   :  { %566 = vperm.xlu0 %1112, %v1306_v61  }
 0x1b5   :  { %570 = vperm.xlu0 %1112, %v1322_v7  }
 0x1b9   :  { %574 = vperm.xlu0 %1112, %v1336_v16  }
 0x1bd   :  { %1114 = vset.pattern.permute.xlu0 %v1135_v46 }
 0x217   :  { %v246_v54 = vpop.xlane.xlu0 %245 }
 0x218   :  { %v247_v55 = vsub.f32 %v239_v50, %v246_v54  ;;  %v803_v50 = vmul.f32 %v1187_v6, %v1187_v6  ;;  %v529_v6 = vmul.f32 %v1194_v8, %v1194_v8  ;;  %v533_v8 = vmul.f32 %v1242_v20, %v1242_v20 }
 0x21a   :  { %v248_v56 = vmul.f32 1.442695, %v247_v55  ;;  %v805_v55 = vmul.f32 %v1213_v13, %v1213_v13  ;;  %v530_v13 = vmul.f32 %v1199_v9, %v1199_v9  ;;  %v534_v9 = vmul.f32 %v1247_v21, %v1247_v21 }
 0x21b   :  { %v349_v27 = vpop.permute.xlu0 %348 }
 0x21c   :  { %1117 = vpow2.f32 %v248_v56  ;;  %v809_v56 = vadd.f32 %v808_v51, %v804_v53 }
 0x223   :  { %v331_v49 = vpop.permute.xlu0 %330 }
 0x226   :  { %v1118_v57 = vpop.eup %1117 }
 0x227   :  { %v250_v58 = vsel %vm243_vm7, %v1118_v57, 0.0 }
 0x228   :  { %251 = vadd.xlane.f32.xlu1 %v250_v58  ;;  %v810_v58 = vadd.f32 %v809_v56, %v806_v0 }
 0x239   :  { %350 = vrot.lane.b32.xlu1 %v1306_v61, %s1133_s27 }
 0x23d   :  { %352 = vrot.lane.b32.xlu1 %v1322_v7, %s1133_s27 }
 0x241   :  { %354 = vrot.lane.b32.xlu1 %v1336_v16, %s1133_s27 }
 0x245   :  { %335 = vperm.xlu1 %1111, %v1306_v61  }
 0x249   :  { %340 = vperm.xlu1 %1111, %v1322_v7  }
 0x24d   :  { %1113 = vset.pattern.permute.xlu1 %v1136_v47 }
 0x2b5   :  { %v252_v23 = vpop.xlane.xlu1 %251 }
 0x2b6   :  { %1119 = vrcp.f32 %v252_v23 }
 0x2b9   :  { %v351_v29 = vpop.permute.xlu1 %350 }
 0x2bd   :  { %v353_v31 = vpop.permute.xlu1 %352 }
 0x2c0   :  { %v1120_v24 = vpop.eup %1119 }
 0x2c1   :  { %v254_v25 = vmul.f32 %v1120_v24, %v1118_v57  ;;  %v355_v36 = vpop.permute.xlu1 %354 }
 0x2c3   :  { %1046 = vmatmul.mubr.msk.f32.vlgmr.msra.gmra.mrb[0].mxu1 %vm158_vm0, %v254_v25 }
 0x2c4   :  { %1050 = vmatprep.mubr.msk.f32.mxu1 %vm158_vm0, %v349_v27 }
 0x2c5   :  { %v336_v14 = vpop.permute.xlu1 %335 }
 0x396   :  { %v324_v30 = vpop.f32.mrb[0].mxu1 }
 0x397   :  { %v726_v32 = vrot.slane %v324_v30, 1  ;;  %v1047_v33 = vpop.f32.mrb[1].mxu1  ;;  %1048 = vmatprep.subr.msk.mxu1 %vm158_vm0, %v324_v30  ;;  %v452_v34 = vmul.f32 %v324_v30, %v324_v30 }
 0x398   :  { %1049 = vmatpush3.xpose.msk.msra.mxu1 %vm158_vm0, %v324_v30 }
 0x399   :  { %998 = vmatmul.mubr.msk.f32.vlgmr.msra.gmra.mrb[10].mxu0 %vm158_vm0, %v726_v32  ;;  %v453_v35 = vsel %vm243_vm7, %v452_v34, 0.0  ;;  %1071 = vmatprep.subr.bf16.mxu1 %v1297_v59 }
 0x39a   :  { %454 = vadd.xlane.f32.xlu1 %v453_v35 }
 0x39b   :  { %1051 = vmatmul.mubr.msk.f32.vlgmr.msra.gmra.mrb[2].mxu1 %vm158_vm0, %v351_v29 }
 0x39c   :  { %1073 = vmatpush1.bf16.msra.mxu1 %v1301_v60  ;;  %1053 = vmatprep.mubr.msk.f32.mxu1 %vm158_vm0, %v353_v31 }
 0x39d   :  { %1075 = vmatprep.subr.bf16.mxu1 %v1315_v3 }
 0x39f   :  { %1054 = vmatmul.mubr.msk.f32.gmra.mrb[4].mxu1 %vm158_vm0, %v355_v36 }
 0x3a0   :  { %1077 = vmatpush1.bf16.msra.mxu1 %v1076_v10  ;;  %520 = vmatprep.mubr.f32.mxu1 %v1131_v39 }
 0x3a1   :  { %1095 = vmatprep.subr.bf16.mxu1 %v1086_v11 }
 0x3a3   :  { %993 = vmatmul.mubr.msk.f32.vlgmr.msra.gmra.mrb[6].mxu1 %vm158_vm0, %v324_v30 }
 0x3a4   :  { %1097 = vmatpush1.bf16.msra.mxu1 %v1088_v17  ;;  %920 = vmatprep.mubr.f32.mxu1 %v1131_v39 }
 0x3a5   :  { %1099 = vmatprep.subr.bf16.mxu1 %v1090_v22 }
 0x3a8   :  { %1101 = vmatpush1.bf16.msra.mxu1 %v1092_v26  ;;  %v1440_v26 = vpop.permute.xlu1 %340 }
 0x3ab   :  { %999 = vmatmul.mubr.msk.f32.vlgmr.msra.gmra.mrb[8].mxu1 %vm158_vm0, %v1311_v62 }
 0x3ac   :  { %926 = vmatprep.mubr.f32.mxu1 %v1131_v39 }
 0x3af   :  { %1000 = vmatmul.mubr.msk.f32.gmra.mrb[10].mxu1 %vm158_vm0, %v1306_v61  ;;  %v544_v61 = vadd.f32 %v530_v13, %v528_v12 }
 0x3b0   :  { %932 = vmatprep.mubr.f32.mxu1 %v1131_v39 }
 0x3b1   :  { %v545_v4 = vadd.f32 %v544_v61, %v532_v19 }
 0x3b3   :  { %1001 = vmatmul.mubr.msk.f32.gmra.mrb[12].mxu1 %vm158_vm0, %v1322_v7  ;;  %v546_v11 = vadd.f32 %v545_v4, %v534_v9 }
 0x3b4   :  { %938 = vmatprep.mubr.f32.mxu1 %v1131_v39  ;;  %v801_v39 = vmul.f32 %v1165_v1, %v1165_v1  ;;  %v527_v1 = vmul.f32 %v1170_v2, %v1170_v2  ;;  %v811_v2 = vrot.slane %v810_v58, 4 }
 0x3b5   :  { %v547_v23 = vrot.slane %v546_v11, 4 }
 0x3b6   :  { %v817_v54 = vadd.f32 %v803_v50, %v801_v39  ;;  %v535_v60 = vadd.f32 %v529_v6, %v527_v1  ;;  %v812_v3 = vadd.f32 %v811_v2, %v810_v58 }
 0x3b7   :  { %1002 = vmatmul.mubr.msk.f32.gmra.mrb[14].mxu1 %vm158_vm0, %v1336_v16  ;;  %v548_v27 = vadd.f32 %v547_v23, %v546_v11 }
 0x3b8   :  { %v818_v57 = vadd.f32 %v817_v54, %v805_v55  ;;  %v536_v63 = vadd.f32 %v535_v60, %v531_v18  ;;  %v813_v16 = vrot.slane %v812_v3, 2  ;;  %v346_v55 = vpop.permute.xlu0 %345 }
 0x3b9   :  { %v549_v30 = vrot.slane %v548_v27, 2 }
 0x3ba   :  { %v819_v59 = vadd.f32 %v818_v57, %v807_v5  ;;  %v537_v10 = vadd.f32 %v536_v63, %v533_v8  ;;  %v814_v15 = vadd.f32 %v813_v16, %v812_v3 }
 0x3bb   :  { %v550_v34 = vadd.f32 %v549_v30, %v548_v27 }
 0x3bc   :  { %v820_v62 = vrot.slane %v819_v59, 4  ;;  %v538_v22 = vrot.slane %v537_v10, 4  ;;  %v815_v20 = vrot.slane %v814_v15, 1  ;;  %v563_v5 = vpop.permute.xlu0 %562 }
 0x3bd   :  { %v551_v39 = vrot.slane %v550_v34, 1 }
 0x3be   :  { %v821_v7 = vadd.f32 %v820_v62, %v819_v59  ;;  %v539_v25 = vadd.f32 %v538_v22, %v537_v10  ;;  %v816_v21 = vadd.f32 %v815_v20, %v814_v15  ;;  %v579_v62 = vsub.s32 0, %v1285_v52 }
 0x3bf   :  { %v552_v54 = vadd.f32 %v551_v39, %v550_v34 }
 0x3c0   :  { %v822_v17 = vrot.slane %v821_v7, 2  ;;  %v540_v29 = vrot.slane %v539_v25, 2  ;;  %v567_v59 = vpop.permute.xlu0 %566 }
 0x3c2   :  { %v823_v24 = vadd.f32 %v822_v17, %v821_v7  ;;  %v541_v33 = vadd.f32 %v540_v29, %v539_v25 }
 0x3c4   :  { %v824_v28 = vrot.slane %v823_v24, 1  ;;  %v542_v48 = vrot.slane %v541_v33, 1  ;;  %v571_v7 = vpop.permute.xlu0 %570 }
 0x3c6   :  { %v825_v31 = vadd.f32 %v824_v28, %v823_v24  ;;  %v543_v53 = vadd.f32 %v542_v48, %v541_v33 }
 0x3c8   :  { %v575_v27 = vpop.permute.xlu0 %574 }
 0x427   :  { %v455_v32 = vpop.xlane.xlu1 %454 }
 0x428   :  { %v826_v35 = vmul.f32 %v816_v21, %v455_v32  ;;  %v827_v36 = vmul.f32 %v825_v31, %v455_v32  ;;  %v553_v56 = vmul.f32 %v543_v53, %v455_v32  ;;  %v554_v0 = vmul.f32 %v552_v54, %v455_v32 }
 0x42a   :  { %v828_v50 = vmax.f32 %v826_v35, 1e-14  ;;  %v829_v51 = vmax.f32 %v827_v36, 1e-14  ;;  %v555_v57 = vmax.f32 %v553_v56, 1e-14 }
 0x42b   :  { %v556_v1 = vmax.f32 %v554_v0, 1e-14 }
 0x42c   :  { %1121 = vrsqrt.f32 %v828_v50 }
 0x42d   :  { %1123 = vrsqrt.f32 %v829_v51 }
 0x42e   :  { %1125 = vrsqrt.f32 %v555_v57 }
 0x42f   :  { %1127 = vrsqrt.f32 %v556_v1 }
 0x436   :  { %v1122_v6 = vpop.eup %1121 }
 0x437   :  { %v1124_v13 = vpop.eup %1123  ;;  %v834_v61 = vrot.slane %v1122_v6, 1 }
 0x438   :  { %v835_v19 = vrot.slane %v1124_v13, 1  ;;  %v1126_v11 = vpop.eup %1125 }
 0x439   :  { %v1128_v23 = vpop.eup %1127 }
 0x46c   :  { %v795_v12 = vpop.f32.mrb[10].mxu0 }
 0x46d   :  { %v797_v58 = vpop.f32.mrb[11].mxu0  ;;  %v838_v63 = vmul.f32 %v834_v61, %v795_v12 }
 0x46e   :  { %v1052_v60 = vpop.f32.mrb[2].mxu1  ;;  %v839_v8 = vmul.f32 %v835_v19, %v797_v58 }
 0x46f   :  { %v433_v18 = vpop.f32.mrb[3].mxu1  ;;  %v439_v10 = vadd.f32 %v1052_v60, %v336_v14  ;;  %v843_v16 = vrot.slane %v838_v63, %v579_v62 }
 0x470   :  { %v434_v2 = vadd.f32 %v433_v18, %v331_v49  ;;  %v847_v17 = vrot.slane %v839_v8, %v579_v62 }
 0x471   :  { %v848_v28 = vmul.f32 %v843_v16, %v563_v5  ;;  %v854_v13 = vmul.f32 %v843_v16, %v575_v27 }
 0x472   :  { %v1055_v4 = vpop.f32.mrb[4].mxu1  ;;  %946 = vperm.xlu0 %1114, %v434_v2   ;;  %v849_v29 = vmul.f32 %v847_v17, %v563_v5  ;;  %v855_v60 = vmul.f32 %v847_v17, %v575_v27 }
 0x473   :  { %v1443_v9 = vadd.f32 %v1055_v4, %v346_v55  ;;  %v443_v3 = vpop.f32.mrb[5].mxu1 }
 0x475   :  { %707 = vperm.xlu1 %1113, %v1443_v9  }
 0x476   :  { %v522_v22 = vpop.f32.mrb[6].mxu1  ;;  %950 = vperm.xlu0 %1114, %v439_v10  }
 0x477   :  { %v559_v15 = vmul.f32 %v1126_v11, %v522_v22  ;;  %v524_v24 = vpop.f32.mrb[7].mxu1 }
 0x478   :  { %v560_v52 = vmul.f32 %v1128_v23, %v524_v24 }
 0x479   :  { %v580_v25 = vrot.slane %v559_v15, %v579_v62 }
 0x47a   :  { %v584_v20 = vrot.slane %v560_v52, %v579_v62  ;;  %1115 = vset.pattern.permute.xlu0 %v1136_v47 }
 0x47b   :  { %692 = vperm.xlu0 %1115, %v434_v2   ;;  %v591_v14 = vmul.f32 %v580_v25, %v575_v27  ;;  %v585_v30 = vmul.f32 %v580_v25, %v563_v5  ;;  %v587_v21 = vmul.f32 %v580_v25, %v567_v59  ;;  %v589_v31 = vmul.f32 %v580_v25, %v571_v7 }
 0x47c   :  { %v592_v32 = vmul.f32 %v584_v20, %v575_v27  ;;  %v586_v33 = vmul.f32 %v584_v20, %v563_v5  ;;  %v588_v34 = vmul.f32 %v584_v20, %v567_v59  ;;  %v590_v35 = vmul.f32 %v584_v20, %v571_v7 }
 0x47d   :  { %v686_v36 = vadd.f32 %v1399_v44, %v591_v14  ;;  %v668_v48 = vadd.f32 %v1382_v37, %v585_v30  ;;  %v674_v49 = vadd.f32 %v1388_v40, %v587_v21  ;;  %v680_v39 = vadd.f32 %v1393_v42, %v589_v31 }
 0x47e   :  { %v922_v47 = vpop.f32.mrb[8].mxu1  ;;  %v688_v50 = vadd.f32 %v1402_v45, %v592_v32  ;;  %v670_v51 = vadd.f32 %v1384_v38, %v586_v33  ;;  %v676_v53 = vadd.f32 %v1391_v41, %v588_v34  ;;  %v682_v54 = vadd.f32 %v1395_v43, %v590_v35 }
 0x47f   :  { %v923_v55 = vadd.f32 %v922_v47, %v848_v28  ;;  %v924_v56 = vpop.f32.mrb[9].mxu1  ;;  %697 = vperm.xlu0 %1115, %v439_v10   ;;  %v444_v44 = vadd.f32 %v443_v3, %v1440_v26  ;;  %v850_v37 = vmul.f32 %v843_v16, %v567_v59  ;;  %v851_v40 = vmul.f32 %v847_v17, %v567_v59 }
 0x480   :  { %v925_v0 = vadd.f32 %v924_v56, %v849_v29  ;;  %v852_v45 = vmul.f32 %v843_v16, %v571_v7  ;;  %v853_v38 = vmul.f32 %v847_v17, %v571_v7 }
 0x482   :  { %v928_v57 = vpop.f32.mrb[10].mxu1 }
 0x483   :  { %v929_v5 = vadd.f32 %v928_v57, %v850_v37  ;;  %v930_v42 = vpop.f32.mrb[11].mxu1  ;;  %702 = vperm.xlu0 %1115, %v444_v44  }
 0x484   :  { %v931_v1 = vadd.f32 %v930_v42, %v851_v40 }
 0x486   :  { %v934_v6 = vpop.f32.mrb[12].mxu1 }
 0x487   :  { %v935_v12 = vadd.f32 %v934_v6, %v852_v45  ;;  %v936_v41 = vpop.f32.mrb[13].mxu1  ;;  %1116 = vset.pattern.permute.xlu0 %v1135_v46 }
 0x488   :  { %v937_v43 = vadd.f32 %v936_v41, %v853_v38  ;;  %954 = vperm.xlu0 %1116, %v444_v44  }
 0x48a   :  { %v940_v58 = vpop.f32.mrb[14].mxu1 }
 0x48b   :  { %v941_v26 = vadd.f32 %v940_v58, %v854_v13  ;;  %v942_v18 = vpop.f32.mrb[15].mxu1 }
 0x48c   :  { %v943_v61 = vadd.f32 %v942_v18, %v855_v60  ;;  %958 = vperm.xlu0 %1116, %v1443_v9  }
 0x4f1   :  { %v947_v59 = vpop.permute.xlu0 %946 }
 0x4f2   :  { %v961_v19 = vadd.f32 %v947_v59, %v923_v55  ;;  %v962_v2 = vadd.f32 %v947_v59, %v925_v0 }
 0x4f4   :  { %1003 = vst [vmem:[%s1509_s3 + $0x40] sm:$0xff] %v961_v19  ;;  %1004 = vst [vmem:[%s1509_s3 + $0x48] sm:$0xff] %v962_v2  ;;  %v708_v46 = vpop.permute.xlu1 %707 }
 0x4f5   :  { %v716_v62 = vadd.f32 %v708_v46, %v686_v36  ;;  %v717_v63 = vadd.f32 %v708_v46, %v688_v50  ;;  %v951_v8 = vpop.permute.xlu0 %950 }
 0x4f6   :  { %v963_v4 = vadd.f32 %v951_v8, %v929_v5  ;;  %v964_v3 = vadd.f32 %v951_v8, %v931_v1 }
 0x4f7   :  { %724 = vst [vmem:[%s1509_s3 + $0x30] sm:$0xff] %v716_v62  ;;  %725 = vst [vmem:[%s1509_s3 + $0x38] sm:$0xff] %v717_v63 }
 0x4f8   :  { %1005 = vst [vmem:[%s1509_s3 + $0x50] sm:$0xff] %v963_v4  ;;  %1006 = vst [vmem:[%s1509_s3 + $0x58] sm:$0xff] %v964_v3 }
 0x4fa   :  { %v693_v9 = vpop.permute.xlu0 %692 }
 0x4fb   :  { %v710_v7 = vadd.f32 %v693_v9, %v668_v48  ;;  %v711_v10 = vadd.f32 %v693_v9, %v670_v51 }
 0x4fd   :  { %718 = vst [vmem:[%s1509_s3] sm:$0xff] %v710_v7  ;;  %719 = vst [vmem:[%s1509_s3 + $0x8] sm:$0xff] %v711_v10 }
 0x4fe   :  { %v698_v11 = vpop.permute.xlu0 %697 }
 0x4ff   :  { %v712_v16 = vadd.f32 %v698_v11, %v674_v49  ;;  %v713_v17 = vadd.f32 %v698_v11, %v676_v53 }
 0x501   :  { %720 = vst [vmem:[%s1509_s3 + $0x10] sm:$0xff] %v712_v16  ;;  %721 = vst [vmem:[%s1509_s3 + $0x18] sm:$0xff] %v713_v17 }
 0x502   :  { %v703_v22 = vpop.permute.xlu0 %702 }
 0x503   :  { %v714_v23 = vadd.f32 %v703_v22, %v680_v39  ;;  %v715_v15 = vadd.f32 %v703_v22, %v682_v54 }
 0x505   :  { %722 = vst [vmem:[%s1509_s3 + $0x20] sm:$0xff] %v714_v23  ;;  %723 = vst [vmem:[%s1509_s3 + $0x28] sm:$0xff] %v715_v15 }
 0x507   :  { %v955_v24 = vpop.permute.xlu0 %954 }
 0x508   :  { %v965_v52 = vadd.f32 %v955_v24, %v935_v12  ;;  %v966_v25 = vadd.f32 %v955_v24, %v937_v43 }
 0x50a   :  { %1007 = vst [vmem:[%s1509_s3 + $0x60] sm:$0xff] %v965_v52  ;;  %1008 = vst [vmem:[%s1509_s3 + $0x68] sm:$0xff] %v966_v25 }
 0x50b   :  { %v959_v27 = vpop.permute.xlu0 %958 }
 0x50c   :  { %v967_v20 = vadd.f32 %v959_v27, %v941_v26  ;;  %v968_v28 = vadd.f32 %v959_v27, %v943_v61 }
 0x50e   :  { %1009 = vst [vmem:[%s1509_s3 + $0x70] sm:$0xff] %v967_v20  ;;  %1010 = vst [vmem:[%s1509_s3 + $0x78] sm:$0xff] %v968_v28 }

</bundles_post_ra>
